<compile_context>
chip_gen: v7x
topology: tpu7x:2x2x1
jax: 0.10.0
libtpu: 0.0.40
codegen_flags: <defaults>
</compile_context>

<pallas_src>
import math

import jax
import jax.numpy as jnp
from jax.experimental import pallas as pl
from jax.experimental.pallas import tpu as pltpu

_SUBLANE = 8
_TB_MAX = 2048  # max rows per batch tile at large B


def _round_up(a, m):
    return ((a + m - 1) // m) * m


def _cdiv(a, b):
    return -(-a // b)


def _batch_tiling(B):
    """Pick (tile_rows, num_tiles) with bounded padding waste and an even
    tile count at large B (so the 'parallel' axis splits across v7x's 2 TCs)."""
    if B <= 512:
        return _round_up(max(B, 1), _SUBLANE), 1
    n_pairs = _cdiv(B, 2 * _TB_MAX)
    n_tiles = 2 * n_pairs
    tb = _round_up(_cdiv(B, n_tiles), _SUBLANE)
    return tb, n_tiles


def policy_mean_kernel(x_ref, w1_ref, b1_ref, w2_ref, b2_ref, w3_ref, b3_ref,
                       mean_ref):
    wdt = w1_ref.dtype  # operand dtype for the MXU (f32 or bf16)
    # hidden layer 1: tanh(x @ W1 + b1)  — f32 accumulate, f32 bias/tanh
    h1 = jnp.tanh(
        jnp.dot(x_ref[...], w1_ref[...], preferred_element_type=jnp.float32)
        + b1_ref[...]
    )
    # hidden layer 2: tanh(h1 @ W2 + b2)
    h2 = jnp.tanh(
        jnp.dot(h1.astype(wdt), w2_ref[...], preferred_element_type=jnp.float32)
        + b2_ref[...]
    )
    # action-mean head, natural-width store
    mean_ref[...] = (
        jnp.dot(h2.astype(wdt), w3_ref[...], preferred_element_type=jnp.float32)
        + b3_ref[...]
    )


def policy_forward(x, params):
    """Runs the Policy forward pass; the mean MLP runs as a Pallas kernel.

    Returns (action_mean, action_log_std, action_std), each (B, num_outputs).
    Weights may be f32 or bf16 (see cast_params_bf16); biases/logstd are f32.
    """
    w1, b1, w2, b2, w3, b3, logstd = params
    B, num_inputs = x.shape
    num_outputs = w3.shape[1]

    tb, n_tiles = _batch_tiling(B)
    b_pad = tb * n_tiles
    grid = (n_tiles,)

    # Cast x to the weight (MXU operand) dtype; pad only the batch rows.
    x_in = x.astype(w1.dtype) if x.dtype != w1.dtype else x
    if b_pad != B:
        x_in = jnp.pad(x_in, ((0, b_pad - B), (0, 0)))

    def const2(shape):
        # Weights / biases stay VMEM-resident across batch tiles.
        return pl.BlockSpec(shape, lambda i: (0, 0))

    mean = pl.pallas_call(
        policy_mean_kernel,
        out_shape=jax.ShapeDtypeStruct((b_pad, num_outputs), jnp.float32),
        grid=grid,
        in_specs=[
            pl.BlockSpec((tb, num_inputs), lambda i: (i, 0)),  # x: batch-tiled
            const2(w1.shape), const2(b1.shape),
            const2(w2.shape), const2(b2.shape),
            const2(w3.shape), const2(b3.shape),
        ],
        out_specs=pl.BlockSpec((tb, num_outputs), lambda i: (i, 0)),
        compiler_params=pltpu.CompilerParams(
            dimension_semantics=("parallel",)),
    )(x_in, w1, b1, w2, b2, w3, b3)

    action_mean = mean[:B] if b_pad != B else mean

    # action_log_std.expand_as(action_mean) and its exp — computed once on the
    # (1, num_outputs) row and broadcast (expand_as is a view in PyTorch).
    # TODO(synk): callers that can consume the (1, num_outputs) row directly
    # should do so to avoid materializing two constant (B, num_outputs) arrays.
    action_log_std = jnp.broadcast_to(logstd, action_mean.shape)
    action_std = jnp.broadcast_to(jnp.exp(logstd), action_mean.shape)
    return action_mean, action_log_std, action_std


def cast_params_bf16(params):
    """One-time cast of the HBM-side matmul operands to bf16 (biases/logstd
    stay f32 so the bias-add / tanh path remains f32 — required on v5e)."""
    w1, b1, w2, b2, w3, b3, logstd = params
    bf = lambda w: w.astype(jnp.bfloat16)
    return (bf(w1), b1, bf(w2), b2, bf(w3), b3, logstd)


def init_policy_params(key, num_inputs, num_outputs, hidden=64):
    """Deterministic init mirroring the PyTorch module's __init__."""
    k1, k2, k3, k4, k5, k6 = jax.random.split(key, 6)

    def linear_init(kw, kb, fan_in, fan_out):
        # PyTorch nn.Linear default: U(-1/sqrt(fan_in), 1/sqrt(fan_in)).
        bound = 1.0 / math.sqrt(fan_in)
        w = jax.random.uniform(kw, (fan_in, fan_out), jnp.float32, -bound, bound)
        b = jax.random.uniform(kb, (1, fan_out), jnp.float32, -bound, bound)
        return w, b

    w1, b1 = linear_init(k1, k2, num_inputs, hidden)
    w2, b2 = linear_init(k3, k4, hidden, hidden)
    w3, b3 = linear_init(k5, k6, hidden, num_outputs)
    # action_mean.weight *= 0.1 ; action_mean.bias *= 0.0
    w3 = w3 * 0.1
    b3 = b3 * 0.0
    # action_log_std = zeros(1, num_outputs)
    logstd = jnp.zeros((1, num_outputs), jnp.float32)
    return (w1, b1, w2, b2, w3, b3, logstd)


def policy_forward_ref(x, params):
    """Pure-JAX (f32) reference of the PyTorch forward, for verification."""
    w1, b1, w2, b2, w3, b3, logstd = params
    h1 = jnp.tanh(x @ w1 + b1)
    h2 = jnp.tanh(h1 @ w2 + b2)
    mean = h2 @ w3 + b3
    ls = jnp.broadcast_to(logstd, mean.shape)
    return mean, ls, jnp.exp(ls)


if __name__ == "__main__":
    # Hopper-v2-like shapes: 11 observations, 3 actions, small batch.
    batch = 8
    num_inputs = 11
    num_outputs = 3

    key = jax.random.PRNGKey(0)
    kx, kp = jax.random.split(key)
    x = jax.random.normal(kx, (batch, num_inputs), dtype=jnp.float32)
    params = init_policy_params(kp, num_inputs, num_outputs)

    # --- f32 path, small batch (single tile, latency regime) ---
    mean, log_std, std = policy_forward(x, params)
    jax.block_until_ready((mean, log_std, std))

    mean_r, log_std_r, std_r = policy_forward_ref(x, params)
    assert mean.shape == (batch, num_outputs)
    assert log_std.shape == (batch, num_outputs)
    assert std.shape == (batch, num_outputs)
    assert jnp.allclose(mean, mean_r, atol=1e-4, rtol=1e-4)
    assert jnp.allclose(log_std, log_std_r, atol=1e-6)
    assert jnp.allclose(std, std_r, atol=1e-6)

    # --- f32 path, awkward large batch (even multi-tile grid, row padding) ---
    big_batch = 1000
    xb = jax.random.normal(jax.random.PRNGKey(1), (big_batch, num_inputs),
                           dtype=jnp.float32)
    mean_b, log_std_b, std_b = policy_forward(xb, params)
    jax.block_until_ready((mean_b, log_std_b, std_b))
    mean_br, _, _ = policy_forward_ref(xb, params)
    assert mean_b.shape == (big_batch, num_outputs)
    assert jnp.allclose(mean_b, mean_br, atol=1e-4, rtol=1e-4)

    # --- bf16-operand path (HBM-traffic halved), f32 accumulation ---
    params_bf16 = cast_params_bf16(params)
    mean_h, log_std_h, std_h = policy_forward(xb, params_bf16)
    jax.block_until_ready((mean_h, log_std_h, std_h))
    assert mean_h.dtype == jnp.float32
    assert jnp.allclose(mean_h, mean_br, atol=2e-2, rtol=2e-2)
    assert jnp.allclose(std_h, jnp.ones_like(std_h), atol=1e-6)

    print("KERNEL_OK")
</pallas_src>

<mosaic_0001>
module attributes {stable_mosaic.version = 11 : i64} {
  func.func @policy_mean_kernel(%arg0: i32, %arg1: memref<8x11xf32, #tpu.memory_space<vmem>>, %arg2: memref<11x64xf32, #tpu.memory_space<vmem>>, %arg3: memref<1x64xf32, #tpu.memory_space<vmem>>, %arg4: memref<64x64xf32, #tpu.memory_space<vmem>>, %arg5: memref<1x64xf32, #tpu.memory_space<vmem>>, %arg6: memref<64x3xf32, #tpu.memory_space<vmem>>, %arg7: memref<1x3xf32, #tpu.memory_space<vmem>>, %arg8: memref<8x3xf32, #tpu.memory_space<vmem>>) attributes {dimension_semantics = [#tpu.dimension_semantics<parallel>], iteration_bounds = array<i64: 1>, scalar_prefetch = 0 : i64, scratch_operands = 0 : i64, tpu.core_type = #tpu.core_type<tc>, window_params = [{transform_indices = @transform_0, window_bounds = array<i64: 8, 11>}, {pipeline_mode = #tpu.pipeline_mode<synchronous>, transform_indices = @transform_1, window_bounds = array<i64: 11, 64>}, {pipeline_mode = #tpu.pipeline_mode<synchronous>, transform_indices = @transform_2, window_bounds = array<i64: 1, 64>}, {pipeline_mode = #tpu.pipeline_mode<synchronous>, transform_indices = @transform_3, window_bounds = array<i64: 64, 64>}, {pipeline_mode = #tpu.pipeline_mode<synchronous>, transform_indices = @transform_4, window_bounds = array<i64: 1, 64>}, {pipeline_mode = #tpu.pipeline_mode<synchronous>, transform_indices = @transform_5, window_bounds = array<i64: 64, 3>}, {pipeline_mode = #tpu.pipeline_mode<synchronous>, transform_indices = @transform_6, window_bounds = array<i64: 1, 3>}, {transform_indices = @transform_7, window_bounds = array<i64: 8, 3>}]} {
    %c0 = arith.constant 0 : index
    %c0_0 = arith.constant 0 : index
    %0 = vector.load %arg1[%c0, %c0_0] : memref<8x11xf32, #tpu.memory_space<vmem>>, vector<8x11xf32>
    %c0_1 = arith.constant 0 : index
    %c0_2 = arith.constant 0 : index
    %1 = vector.load %arg2[%c0_1, %c0_2] : memref<11x64xf32, #tpu.memory_space<vmem>>, vector<11x64xf32>
    %cst = arith.constant dense<0.000000e+00> : vector<8x64xf32>
    %2 = tpu.matmul %0, %1, %cst {dimension_numbers = #tpu.dot_dimension_numbers<[1], [0], [0], [1], [0, 0, 1, 1], [], []>} : vector<8x11xf32>, vector<11x64xf32>, vector<8x64xf32> -> vector<8x64xf32>
    %c0_3 = arith.constant 0 : index
    %c0_4 = arith.constant 0 : index
    %3 = vector.load %arg3[%c0_3, %c0_4] : memref<1x64xf32, #tpu.memory_space<vmem>>, vector<1x64xf32>
    %4 = vector.broadcast %3 : vector<1x64xf32> to vector<8x64xf32>
    %5 = arith.addf %2, %4 : vector<8x64xf32>
    %6 = math.tanh %5 : vector<8x64xf32>
    %c0_5 = arith.constant 0 : index
    %c0_6 = arith.constant 0 : index
    %7 = vector.load %arg4[%c0_5, %c0_6] : memref<64x64xf32, #tpu.memory_space<vmem>>, vector<64x64xf32>
    %cst_7 = arith.constant dense<0.000000e+00> : vector<8x64xf32>
    %8 = tpu.matmul %6, %7, %cst_7 {dimension_numbers = #tpu.dot_dimension_numbers<[1], [0], [0], [1], [0, 0, 1, 1], [], []>} : vector<8x64xf32>, vector<64x64xf32>, vector<8x64xf32> -> vector<8x64xf32>
    %c0_8 = arith.constant 0 : index
    %c0_9 = arith.constant 0 : index
    %9 = vector.load %arg5[%c0_8, %c0_9] : memref<1x64xf32, #tpu.memory_space<vmem>>, vector<1x64xf32>
    %10 = vector.broadcast %9 : vector<1x64xf32> to vector<8x64xf32>
    %11 = arith.addf %8, %10 : vector<8x64xf32>
    %12 = math.tanh %11 : vector<8x64xf32>
    %c0_10 = arith.constant 0 : index
    %c0_11 = arith.constant 0 : index
    %13 = vector.load %arg6[%c0_10, %c0_11] : memref<64x3xf32, #tpu.memory_space<vmem>>, vector<64x3xf32>
    %cst_12 = arith.constant dense<0.000000e+00> : vector<8x3xf32>
    %14 = tpu.matmul %12, %13, %cst_12 {dimension_numbers = #tpu.dot_dimension_numbers<[1], [0], [0], [1], [0, 0, 1, 1], [], []>} : vector<8x64xf32>, vector<64x3xf32>, vector<8x3xf32> -> vector<8x3xf32>
    %c0_13 = arith.constant 0 : index
    %c0_14 = arith.constant 0 : index
    %15 = vector.load %arg7[%c0_13, %c0_14] : memref<1x3xf32, #tpu.memory_space<vmem>>, vector<1x3xf32>
    %16 = vector.broadcast %15 : vector<1x3xf32> to vector<8x3xf32>
    %17 = arith.addf %14, %16 : vector<8x3xf32>
    %c0_15 = arith.constant 0 : index
    %c0_16 = arith.constant 0 : index
    %18 = vector.load %arg8[%c0_15, %c0_16] : memref<8x3xf32, #tpu.memory_space<vmem>>, vector<8x3xf32>
    tpu.vector_store %arg8[%c0_15, %c0_16], %17 {strides = array<i32>} : memref<8x3xf32, #tpu.memory_space<vmem>>, vector<8x3xf32>,
    return
  }
  func.func @transform_0(%arg0: i32) -> (i32, i32) {
    %c0_i32 = arith.constant 0 : i32
    %c0_i32_0 = arith.constant 0 : i32
    return %arg0, %c0_i32 : i32, i32
  }
  func.func @transform_1(%arg0: i32) -> (i32, i32) {
    %c0_i32 = arith.constant 0 : i32
    %c0_i32_0 = arith.constant 0 : i32
    %c0_i32_1 = arith.constant 0 : i32
    return %c0_i32, %c0_i32_0 : i32, i32
  }
  func.func @transform_2(%arg0: i32) -> (i32, i32) {
    %c0_i32 = arith.constant 0 : i32
    %c0_i32_0 = arith.constant 0 : i32
    %c0_i32_1 = arith.constant 0 : i32
    return %c0_i32, %c0_i32_0 : i32, i32
  }
  func.func @transform_3(%arg0: i32) -> (i32, i32) {
    %c0_i32 = arith.constant 0 : i32
    %c0_i32_0 = arith.constant 0 : i32
    %c0_i32_1 = arith.constant 0 : i32
    return %c0_i32, %c0_i32_0 : i32, i32
  }
  func.func @transform_4(%arg0: i32) -> (i32, i32) {
    %c0_i32 = arith.constant 0 : i32
    %c0_i32_0 = arith.constant 0 : i32
    %c0_i32_1 = arith.constant 0 : i32
    return %c0_i32, %c0_i32_0 : i32, i32
  }
  func.func @transform_5(%arg0: i32) -> (i32, i32) {
    %c0_i32 = arith.constant 0 : i32
    %c0_i32_0 = arith.constant 0 : i32
    %c0_i32_1 = arith.constant 0 : i32
    return %c0_i32, %c0_i32_0 : i32, i32
  }
  func.func @transform_6(%arg0: i32) -> (i32, i32) {
    %c0_i32 = arith.constant 0 : i32
    %c0_i32_0 = arith.constant 0 : i32
    %c0_i32_1 = arith.constant 0 : i32
    return %c0_i32, %c0_i32_0 : i32, i32
  }
  func.func @transform_7(%arg0: i32) -> (i32, i32) {
    %c0_i32 = arith.constant 0 : i32
    %c0_i32_0 = arith.constant 0 : i32
    return %arg0, %c0_i32 : i32, i32
  }
}

</mosaic_0001>

<bundles_post_ra>
// kernel: tpu_custom_call.1
= control target key start
LH: loop header
LB: loop body
LE: loop exit
PB: predicated region body
PF: predicated region fallthrough
CT: control target
= control target key end

     0   :  { %12 = vsyncpa [#allocation3], 0  ;;  %s450_s24 = smov [#allocation2]   ;;  %s586_s0 = inlined_call_operand.vmem [shape: f32[8,11], index: 0, kind: input, shape index: {}]   ;;  %s587_s1 = inlined_call_operand.hbm [shape: f32[11,64], index: 1, kind: input, shape index: {}]   ;;  %s588_s2 = inlined_call_operand.vmem [shape: f32[1,64], index: 2, kind: input, shape index: {}]   ;;  %s589_s3 = inlined_call_operand.vmem [shape: f32[64,64], index: 3, kind: input, shape index: {}]   ;;  %s590_s4 = inlined_call_operand.vmem [shape: f32[1,64], index: 4, kind: input, shape index: {}]   ;;  %s591_s5 = inlined_call_operand.vmem [shape: f32[64,3], index: 5, kind: input, shape index: {}]   ;;  %s592_s6 = inlined_call_operand.vmem [shape: f32[1,3], index: 6, kind: input, shape index: {}]   ;;  %s593_s7 = inlined_call_operand.vmem [shape: f32[8,3], index: 7, kind: output, shape index: {}]  }
   0x1   :  { %s20_s25 = sshll.u32 %s450_s24, 4  ;;  %s426_s28 = scalar_lea.hbm %s587_s1, 256  ;;  %s21_s25 = int_to_ptr.vmem [resolvable:$true] %s20_s25 }
   0x2   :  { %p427_p0 = scmp.ne.s32.totalorder %s587_s1, %s426_s28  ;;  %p430_p1 = scmp.lt.u32.totalorder %s426_s28, %s587_s1 }
   0x4   :  { %p432_p2 = pnand %p430_p1, %p427_p0 }
   0x6   :  { %435 = shalt.err (!%p432_p2)
}
   0x7   :  { %s436_s10 = scalar_lea.vmem %s21_s25, 256  ;;  %p441_p4 = scmp.lt.s32.totalorder %s21_s25, %s21_s25 }
   0x8   :  { %p437_p3 = scmp.ne.s32.totalorder %s21_s25, %s436_s10  ;;  %p442_p5 = scmp.lt.s32.totalorder %s436_s10, %s436_s10 }
   0xa   :  { %p443_p6 = por %p442_p5, %p441_p4 }
   0xc   :  { %p444_p7 = pnand %p443_p6, %p437_p3 }
   0xe   :  { %447 = shalt.err (!%p444_p7)
}
   0xf   :  { %s451_s11 = smov 128   ;;  %s452_s12 = smov 8  }
  0x10   :  { %26 = dma.hbm_to_vmem [thread:$0]  %s587_s1, 256, %s21_s25, [#allocation3], %s451_s11, %s451_s11, %s452_s12  }
  0x11   :  { %448 = dma.done.wait [#allocation3], 256  }
  0x12   :  { %449 = vsyncadd [#allocation3], 4294967040  ;;  %v453_v0 = vmov 0.0|0.0   ;;  %vm454_vm0 = vmmov 0   ;;  %v455_v1 = vmov 0.0   ;;  %vm54_vm1 = vcmask 1042432  }
  0x13   :  { %387 = vmatprep.subr.bf16.mxu0 %v453_v0  ;;  %391 = vmatprep.subr.bf16.mxu1 %v453_v0  ;;  %v41_v2 = vld [vmem:[#allocation2] sm:$0xff]  ;;  %v42_v3 = vld [vmem:[#allocation2 + $0x8] sm:$0x7]  ;;  %vm456_vm2 = vmmov 1   ;;  %vm50_vm4 = vcmask 89088   ;;  %v131_v9 = vld [vmem:[%s589_s3 + $0x10] sm:$0xff] }
  0x14   :  { %346 = vmatprep.mubr.msk.f32.mxu0 %vm454_vm0, %v455_v1  ;;  %365 = vmatprep.mubr.msk.f32.mxu1 %vm454_vm0, %v455_v1  ;;  %vm389_vm3 = vmpackc.low %vm54_vm1, %vm456_vm2  ;;  %v388_v4 = vpack.c.bf16 %v42_v3, %v41_v2  ;;  %v129_v5 = vld [vmem:[%s589_s3] sm:$0xff]  ;;  %v130_v6 = vld [vmem:[%s589_s3 + $0x8] sm:$0xff]  ;;  %vm144_vm5 = vcmask 523264   ;;  %vm307_vm6 = vcmask 23552  }
  0x15   :  { %v392_v7 = vpack.c.bf16 %v130_v6, %v129_v5  ;;  %v40_v8 = vld [vmem:[%s586_s0] sm:$0xff]  ;;  %v132_v10 = vld [vmem:[%s589_s3 + $0x18] sm:$0xff]  ;;  %v134_v13 = vld [vmem:[%s589_s3 + $0x28] sm:$0xff] }
  0x16   :  { %390 = vmatpush3.bf16.msk.msra.mxu0 %vm389_vm3, %v388_v4  ;;  %v395_v11 = vpack.c.bf16 %v132_v10, %v131_v9  ;;  %v133_v12 = vld [vmem:[%s589_s3 + $0x20] sm:$0xff]  ;;  %v135_v15 = vld [vmem:[%s589_s3 + $0x30] sm:$0xff]  ;;  %v136_v16 = vld [vmem:[%s589_s3 + $0x38] sm:$0xff] }
  0x17   :  { %393 = vmatpush3.bf16.msra.mxu1 %v392_v7  ;;  %403 = vmatprep.subr.bf16.mxu0 %v453_v0  ;;  %v398_v14 = vpack.c.bf16 %v134_v13, %v133_v12  ;;  %v401_v17 = vpack.c.bf16 %v136_v16, %v135_v15  ;;  %v219_v18 = vld [vmem:[%s591_s5] sm:$0xff]  ;;  %v220_v19 = vld [vmem:[%s591_s5 + $0x8] sm:$0xff]  ;;  %v221_v26 = vld [vmem:[%s591_s5 + $0x10] sm:$0xff] }
  0x18   :  { %394 = vmatprep.subr.bf16.mxu1 %v453_v0  ;;  %v404_v20 = vpack.c.bf16 %v220_v19, %v219_v18  ;;  %v314_v21 = vld [vmem:[%s588_s2] ss:$0 sm:$0xff]  ;;  %v222_v27 = vld [vmem:[%s591_s5 + $0x18] sm:$0xff]  ;;  %v224_v30 = vld [vmem:[%s591_s5 + $0x28] sm:$0xff] }
  0x19   :  { %347 = vmatmul.mubr.msk.f32.vlgmr.msra.gmra.mrb[0].mxu0 %vm50_vm4, %v40_v8  ;;  %v407_v28 = vpack.c.bf16 %v222_v27, %v221_v26  ;;  %v223_v29 = vld [vmem:[%s591_s5 + $0x20] sm:$0xff]  ;;  %v225_v32 = vld [vmem:[%s591_s5 + $0x30] sm:$0xff]  ;;  %v226_v33 = vld [vmem:[%s591_s5 + $0x38] sm:$0xff] }
  0x1a   :  { %384 = vmatprep.mubr.msk.f32.mxu0 %vm454_vm0, %v455_v1  ;;  %405 = vmatpush3.bf16.msra.mxu0 %v404_v20  ;;  %v410_v31 = vpack.c.bf16 %v224_v30, %v223_v29  ;;  %v413_v34 = vpack.c.bf16 %v226_v33, %v225_v32  ;;  %v317_v35 = vld [vmem:[%s590_s4] ss:$0 sm:$0xff] }
  0x1b   :  { %396 = vmatpush3.bf16.msra.mxu1 %v395_v11  ;;  %406 = vmatprep.subr.bf16.mxu0 %v453_v0  ;;  %v319_v40 = vld [vmem:[%s592_s6] ss:$0 sm:$0xff] }
  0x1c   :  { %397 = vmatprep.subr.bf16.mxu1 %v453_v0 }
  0x1e   :  { %408 = vmatpush3.bf16.msra.mxu0 %v407_v28 }
  0x1f   :  { %399 = vmatpush3.bf16.msra.mxu1 %v398_v14  ;;  %409 = vmatprep.subr.bf16.mxu0 %v453_v0 }
  0x20   :  { %400 = vmatprep.subr.bf16.mxu1 %v453_v0 }
  0x22   :  { %411 = vmatpush3.bf16.msra.mxu0 %v410_v31 }
  0x23   :  { %402 = vmatpush3.bf16.msra.mxu1 %v401_v17  ;;  %412 = vmatprep.subr.bf16.mxu0 %v453_v0 }
  0x26   :  { %414 = vmatpush3.bf16.msra.mxu0 %v413_v34 }
  0xec   :  { %v124_v22 = vpop.f32.mrb[0].mxu0 }
  0xed   :  { %v125_v23 = vadd.f32 %v314_v21, %v124_v22  ;;  %v348_v24 = vpop.f32.mrb[1].mxu0 }
  0xef   :  { %422 = vtanh.f32 %v125_v23 }
  0xf9   :  { %v423_v25 = vpop.eup %422 }
  0xfa   :  { %366 = vmatmul.mubr.msk.f32.vlgmr.msra.gmra.mrb[0].mxu1 %vm144_vm5, %v423_v25 }
 0x1cd   :  { %v214_v36 = vpop.f32.mrb[0].mxu1 }
 0x1ce   :  { %v215_v37 = vadd.f32 %v317_v35, %v214_v36  ;;  %v367_v38 = vpop.f32.mrb[1].mxu1 }
 0x1d0   :  { %424 = vtanh.f32 %v215_v37 }
 0x1da   :  { %v425_v39 = vpop.eup %424 }
 0x1db   :  { %385 = vmatmul.mubr.msk.f32.vlgmr.msra.gmra.mrb[2].mxu0 %vm144_vm5, %v425_v39 }
 0x2ae   :  { %v303_v41 = vpop.f32.mrb[2].mxu0 }
 0x2af   :  { %v304_v42 = vadd.f32 %v319_v40, %v303_v41  ;;  %v386_v43 = vpop.f32.mrb[3].mxu0 }
 0x2b1   :  { %308 = vst.msk [vmem:[%s593_s7] sm:$0xff] %vm307_vm6, %v304_v42 }
 0x2b2   :  { %313 = vsyncpa [#allocation3], 1 }

</bundles_post_ra>
